<compile_context>
chip_gen: v7x
topology: tpu7x:2x2x1
jax: 0.10.0
libtpu: 0.0.40
codegen_flags: <defaults>
</compile_context>

<pallas_src>
import functools

import jax
import jax.numpy as jnp
from jax.experimental import pallas as pl
from jax.experimental.pallas import tpu as pltpu

_NEG_BIG = -1.0e30                      # finite "-inf" (avoids inf-inf NaNs)
_DEFAULT_VMEM_BUDGET = 24 * 1024 * 1024  # accounted bytes used to size tiles


def _cdiv(a, b):
    return -(-a // b)


def _round_up(a, m):
    return _cdiv(a, m) * m


# ----------------------------------------------------------------------------
# VMEM accounting / tile selection
# ----------------------------------------------------------------------------
def _fixed_cost(H, w_bytes):
    # Resident weights W_in^T (H,H) and W_out^T (2H,H); constant index maps
    # still get two buffers each by default -> budget 2x.
    return 2 * 3 * H * H * w_bytes


def _block_cost(tb, tlk, H, c_bytes, q_bytes, o_bytes):
    ctx = 2 * tb * tlk * H * c_bytes          # double-buffered context block
    tmp = 2 * tb * tlk * H * c_bytes          # broadcast-multiply temporaries
    tmp += 4 * tb * tlk * 4                   # f32 scores / exponentials
    row = tb * H * (2 * q_bytes + 2 * o_bytes + 4 * 4)  # q/out dbuf + f32 qp/mix/acc
    return ctx + tmp + row


def _choose_tiles(B, Lk, H, c_bytes, q_bytes, o_bytes, w_bytes, budget):
    avail = max(budget - _fixed_cost(H, w_bytes), 1 << 20)

    def cost(tb, tlk):
        return _block_cost(tb, tlk, H, c_bytes, q_bytes, o_bytes)

    def tb_list():
        if B <= 8:
            return [B]
        hi = min(512, B)
        cands = list(range(hi - hi % 8, 7, -8))
        if B <= 512 and B not in cands:
            cands = [B] + cands            # full-extent block is always legal
        return cands

    # Path A: whole key axis in a single block (largest feasible batch tile).
    for tb in tb_list():
        if cost(tb, Lk) <= avail:
            if tb == B or tb >= min(B, 64):
                return tb, Lk
            break

    # Path B: tile the key axis (flash-style online softmax in the kernel).
    for tlk in (512, 384, 256, 128, 64, 32, 16, 8):
        if tlk >= Lk:
            continue
        for tb in tb_list():
            if cost(tb, tlk) <= avail:
                return tb, tlk

    # Pathological fallback (e.g. enormous H: resident weights dominate VMEM).
    # TODO(synk): K-tile the two projections if H*H weights ever exceed VMEM.
    return (B if B <= 8 else 8), (Lk if Lk <= 8 else 8)


# ----------------------------------------------------------------------------
# Kernels
# ----------------------------------------------------------------------------
def _attn_single_block_kernel(q_ref, c_ref, w_in_t_ref, w_out_t_ref, out_ref,
                              *maybe_wts_ref):
    # q_ref: (TB, H)   c_ref: (TB, Lk, H)   w_in_t: (H, H)   w_out_t: (2H, H)
    H = q_ref.shape[-1]
    c = c_ref[...]                                          # native dtype

    # linear_in (no bias): qp = q @ W_in^T  (MXU, f32 accumulation).
    qp = jnp.dot(q_ref[...], w_in_t_ref[...],
                 preferred_element_type=jnp.float32)        # (TB, H) f32

    # scores[b,k] = sum_h qp[b,h] * c[b,k,h]; multiply in the context dtype,
    # accumulate in f32 (no transposed / upcast copy of the context).
    qp_c = qp.astype(c.dtype)
    scores = jnp.sum(qp_c[:, None, :] * c, axis=-1, dtype=jnp.float32)

    m = jnp.max(scores, axis=-1, keepdims=True)
    e = jnp.exp(scores - m)                                  # (TB, Lk) f32
    inv_denom = pl.reciprocal(jnp.sum(e, axis=-1, keepdims=True), approx=False)

    # mix with UNnormalized exponentials; normalize once per row afterwards.
    e_c = e.astype(c.dtype)
    mix = jnp.sum(e_c[:, :, None] * c, axis=1, dtype=jnp.float32) * inv_denom

    # linear_out on concat([mix, qp]): one fused resident (2H, H) operand,
    # contracted via two static slices (no in-kernel lane concatenate).
    wdt = w_out_t_ref.dtype
    out = jnp.tanh(
        jnp.dot(mix.astype(wdt), w_out_t_ref[:H, :],
                preferred_element_type=jnp.float32)
        + jnp.dot(qp.astype(wdt), w_out_t_ref[H:, :],
                  preferred_element_type=jnp.float32))
    out_ref[...] = out.astype(out_ref.dtype)

    if maybe_wts_ref:
        maybe_wts_ref[0][...] = (e * inv_denom).astype(maybe_wts_ref[0].dtype)


def _attn_lk_tiled_kernel(with_scores, lk_total, *refs):
    # Grid: (batch tiles [parallel], Lk tiles [arbitrary, innermost]).
    if with_scores:
        (q_ref, c_ref, w_in_t_ref, w_out_t_ref,
         out_ref, scores_ref, qp_sc, m_sc, l_sc, acc_sc) = refs
    else:
        (q_ref, c_ref, w_in_t_ref, w_out_t_ref,
         out_ref, qp_sc, m_sc, l_sc, acc_sc) = refs
        scores_ref = None

    H = q_ref.shape[-1]
    TLK = c_ref.shape[1]
    kj = pl.program_id(1)

    @pl.when(kj == 0)
    def _():
        qp_sc[...] = jnp.dot(q_ref[...], w_in_t_ref[...],
                             preferred_element_type=jnp.float32)
        m_sc[...] = jnp.full_like(m_sc, _NEG_BIG)
        l_sc[...] = jnp.zeros_like(l_sc)
        acc_sc[...] = jnp.zeros_like(acc_sc)

    c = c_ref[...]                                           # (TB, TLK, H)
    qp_c = qp_sc[...].astype(c.dtype)
    s = jnp.sum(qp_c[:, None, :] * c, axis=-1, dtype=jnp.float32)   # (TB, TLK)

    if scores_ref is not None:
        scores_ref[...] = s.astype(scores_ref.dtype)

    # Mask keys past the true sequence end (only matters on a ragged last tile).
    kid = kj * TLK + jax.lax.broadcasted_iota(jnp.int32, s.shape, 1)
    s = jnp.where(kid < lk_total, s, _NEG_BIG)

    # Online softmax with UNnormalized mix accumulation.
    m_prev = m_sc[...]
    m_new = jnp.maximum(m_prev, jnp.max(s, axis=-1, keepdims=True))
    alpha = jnp.exp(m_prev - m_new)
    e = jnp.exp(s - m_new)                                   # (TB, TLK) f32
    l_sc[...] = alpha * l_sc[...] + jnp.sum(e, axis=-1, keepdims=True)
    e_c = e.astype(c.dtype)
    acc_sc[...] = alpha * acc_sc[...] + jnp.sum(e_c[:, :, None] * c, axis=1,
                                                dtype=jnp.float32)
    m_sc[...] = m_new

    @pl.when(kj == pl.num_programs(1) - 1)
    def _():
        mix = acc_sc[...] * pl.reciprocal(l_sc[...], approx=False)
        qp = qp_sc[...]
        wdt = w_out_t_ref.dtype
        out = jnp.tanh(
            jnp.dot(mix.astype(wdt), w_out_t_ref[:H, :],
                    preferred_element_type=jnp.float32)
            + jnp.dot(qp.astype(wdt), w_out_t_ref[H:, :],
                      preferred_element_type=jnp.float32))
        out_ref[...] = out.astype(out_ref.dtype)


# ----------------------------------------------------------------------------
# Wrapper
# ----------------------------------------------------------------------------
@functools.partial(jax.jit,
                   static_argnames=("return_att_weights", "batch_block",
                                    "lk_block", "vmem_budget_bytes"))
def attention_layer_forward(cls_output, embraced_features_token, w_in, w_out,
                            return_att_weights=True, batch_block=None,
                            lk_block=None, vmem_budget_bytes=None):
    """JAX/Pallas equivalent of AttentionLayer.forward (unsqueeze_idx=1)."""
    # --- glue: mimic the unsqueeze logic of the PyTorch module ---
    query = cls_output if cls_output.ndim == 3 else cls_output[:, None, :]
    context = (embraced_features_token if embraced_features_token.ndim == 3
               else embraced_features_token[:, None, :])

    B, Lq, H = query.shape
    _, Lk, _ = context.shape
    if Lq != 1:
        # TODO(synk): multi-row 3D query (Lq > 1) path not implemented; the
        # module's intended use passes a single CLS vector per example.
        raise NotImplementedError("AttentionLayer Pallas kernel expects Lq == 1")

    q2d = query[:, 0, :]                      # (B, H)  drop the size-1 Lq axis
    w_in_t = w_in.T                           # (H, H)   y = x @ W^T layout
    w_out_t = w_out.T                         # (2H, H)  fused output projection

    c_bytes = jnp.dtype(context.dtype).itemsize
    q_bytes = jnp.dtype(query.dtype).itemsize
    o_bytes = q_bytes
    w_bytes = jnp.dtype(w_in.dtype).itemsize
    budget = vmem_budget_bytes if vmem_budget_bytes else _DEFAULT_VMEM_BUDGET

    TB, TLK = _choose_tiles(B, Lk, H, c_bytes, q_bytes, o_bytes, w_bytes, budget)
    if batch_block is not None:
        TB = min(batch_block, B)
    if lk_block is not None:
        TLK = min(lk_block, Lk)
    # v7x megacore: give the "parallel" batch axis >= 2 grid steps when B allows.
    if batch_block is None and TB == B and B >= 16:
        TB = _round_up(_cdiv(B, 2), 8)

    est = _fixed_cost(H, w_bytes) + _block_cost(TB, TLK, H, c_bytes, q_bytes,
                                                o_bytes)
    vmem_limit = int(min(max(2 * est, 32 * 1024 * 1024), 48 * 1024 * 1024))

    flops = 2 * B * (3 * H * H + 2 * Lk * H)
    bytes_accessed = (B * Lk * H * c_bytes + B * H * (q_bytes + o_bytes)
                      + 3 * H * H * w_bytes)
    cost = pl.CostEstimate(flops=flops, transcendentals=B * (Lk + H),
                           bytes_accessed=bytes_accessed)

    nb = _cdiv(B, TB)

    if TLK == Lk:
        # ------- Path A: whole key axis resident, single softmax pass -------
        in_specs = [
            pl.BlockSpec((TB, H), lambda i: (i, 0)),          # query rows
            pl.BlockSpec((TB, Lk, H), lambda i: (i, 0, 0)),   # context
            pl.BlockSpec((H, H), lambda i: (0, 0)),           # W_in^T (resident)
            pl.BlockSpec((2 * H, H), lambda i: (0, 0)),       # W_out^T (resident)
        ]
        if return_att_weights:
            out_shape = (jax.ShapeDtypeStruct((B, H), query.dtype),
                         jax.ShapeDtypeStruct((B, Lk), query.dtype))
            out_specs = (pl.BlockSpec((TB, H), lambda i: (i, 0)),
                         pl.BlockSpec((TB, Lk), lambda i: (i, 0)))
        else:
            out_shape = jax.ShapeDtypeStruct((B, H), query.dtype)
            out_specs = pl.BlockSpec((TB, H), lambda i: (i, 0))

        result = pl.pallas_call(
            _attn_single_block_kernel,
            out_shape=out_shape,
            grid_spec=pltpu.PrefetchScalarGridSpec(
                num_scalar_prefetch=0, grid=(nb,),
                in_specs=in_specs, out_specs=out_specs),
            compiler_params=pltpu.CompilerParams(
                dimension_semantics=("parallel",),
                vmem_limit_bytes=vmem_limit),
            cost_estimate=cost,
        )(q2d, context, w_in_t, w_out_t)

        if return_att_weights:
            out, weights = result
            return jnp.squeeze(out), weights.reshape(B, 1, Lk)
        return (jnp.squeeze(result),)

    # ---------- Path B: Lk-tiled online softmax (long contexts) ----------
    nk = _cdiv(Lk, TLK)
    kernel = functools.partial(_attn_lk_tiled_kernel, return_att_weights, Lk)
    in_specs = [
        pl.BlockSpec((TB, H), lambda i, k: (i, 0)),
        pl.BlockSpec((TB, TLK, H), lambda i, k: (i, k, 0)),
        pl.BlockSpec((H, H), lambda i, k: (0, 0)),
        pl.BlockSpec((2 * H, H), lambda i, k: (0, 0)),
    ]
    scratch = [pltpu.VMEM((TB, H), jnp.float32),     # qp
               pltpu.VMEM((TB, 1), jnp.float32),     # running max
               pltpu.VMEM((TB, 1), jnp.float32),     # running denominator
               pltpu.VMEM((TB, H), jnp.float32)]     # unnormalized mix acc
    if return_att_weights:
        out_shape = (jax.ShapeDtypeStruct((B, H), query.dtype),
                     jax.ShapeDtypeStruct((B, Lk), jnp.float32))
        out_specs = (pl.BlockSpec((TB, H), lambda i, k: (i, 0)),
                     pl.BlockSpec((TB, TLK), lambda i, k: (i, k)))
    else:
        out_shape = jax.ShapeDtypeStruct((B, H), query.dtype)
        out_specs = pl.BlockSpec((TB, H), lambda i, k: (i, 0))

    result = pl.pallas_call(
        kernel,
        out_shape=out_shape,
        grid_spec=pltpu.PrefetchScalarGridSpec(
            num_scalar_prefetch=0, grid=(nb, nk),
            in_specs=in_specs, out_specs=out_specs,
            scratch_shapes=scratch),
        compiler_params=pltpu.CompilerParams(
            dimension_semantics=("parallel", "arbitrary"),
            vmem_limit_bytes=vmem_limit),
        cost_estimate=cost,
    )(q2d, context, w_in_t, w_out_t)

    if return_att_weights:
        out, scores = result
        # The kernel streams raw scores (tiny (B, Lk) slab next to the context
        # stream); normalizing here keeps the online-softmax pass single-sweep.
        weights = jax.nn.softmax(scores, axis=-1).astype(query.dtype)
        return jnp.squeeze(out), weights.reshape(B, 1, Lk)
    return (jnp.squeeze(result),)


# ----------------------------------------------------------------------------
# Pure-JAX reference (validation)
# ----------------------------------------------------------------------------
def _reference_forward(cls_output, embraced_features_token, w_in, w_out):
    query = cls_output if cls_output.ndim == 3 else cls_output[:, None, :]
    context = (embraced_features_token if embraced_features_token.ndim == 3
               else embraced_features_token[:, None, :])
    qp = jnp.einsum("blh,oh->blo", query, w_in)
    scores = jnp.einsum("bqh,bkh->bqk", qp, context)
    weights = jax.nn.softmax(scores, axis=-1)
    mix = jnp.einsum("bqk,bkh->bqh", weights, context)
    combined = jnp.concatenate([mix, qp], axis=-1)
    out = jnp.tanh(jnp.einsum("blh,oh->blo", combined, w_out))
    return jnp.squeeze(out), weights


if __name__ == "__main__":
    # ---- cases 1/2: small shapes matching the module's intended use --------
    B, Lk, H = 2, 8, 32
    k1, k2, k3, k4 = jax.random.split(jax.random.PRNGKey(0), 4)
    cls_output = jax.random.normal(k1, (B, H), dtype=jnp.float32)
    embraced = jax.random.normal(k2, (B, Lk, H), dtype=jnp.float32)
    # nn.Linear weights in PyTorch layout: (out_features, in_features).
    w_in = jax.random.normal(k3, (H, H), dtype=jnp.float32) * 0.05
    w_out = jax.random.normal(k4, (H, 2 * H), dtype=jnp.float32) * 0.05

    out, weights = attention_layer_forward(cls_output, embraced, w_in, w_out,
                                           return_att_weights=True)
    (out_only,) = attention_layer_forward(cls_output, embraced, w_in, w_out,
                                          return_att_weights=False)
    jax.block_until_ready((out, weights, out_only))

    ref_out, ref_w = _reference_forward(cls_output, embraced, w_in, w_out)
    assert out.shape == (B, H)
    assert weights.shape == (B, 1, Lk)
    assert jnp.allclose(out, ref_out, atol=1e-5, rtol=1e-5)
    assert jnp.allclose(weights, ref_w, atol=1e-5, rtol=1e-5)
    assert jnp.allclose(out_only, ref_out, atol=1e-5, rtol=1e-5)

    # ---- case 3: force the Lk-tiled online-softmax path --------------------
    B2, Lk2, H2 = 16, 256, 128
    k5, k6, k7, k8 = jax.random.split(jax.random.PRNGKey(1), 4)
    cls2 = jax.random.normal(k5, (B2, H2), dtype=jnp.float32)
    embraced2 = jax.random.normal(k6, (B2, Lk2, H2), dtype=jnp.float32)
    w_in2 = jax.random.normal(k7, (H2, H2), dtype=jnp.float32) * 0.05
    w_out2 = jax.random.normal(k8, (H2, 2 * H2), dtype=jnp.float32) * 0.05

    out2, weights2 = attention_layer_forward(
        cls2, embraced2, w_in2, w_out2, return_att_weights=True,
        batch_block=8, lk_block=128)
    jax.block_until_ready((out2, weights2))

    ref_out2, ref_w2 = _reference_forward(cls2, embraced2, w_in2, w_out2)
    assert out2.shape == (B2, H2)
    assert weights2.shape == (B2, 1, Lk2)
    assert jnp.allclose(out2, ref_out2, atol=1e-4, rtol=1e-4)
    assert jnp.allclose(weights2, ref_w2, atol=1e-4, rtol=1e-4)

    print("KERNEL_OK")
</pallas_src>

<mosaic_0001>
module attributes {stable_mosaic.version = 11 : i64} {
  func.func @_attn_single_block_kernel(%arg0: i32, %arg1: memref<2x32xf32, #tpu.memory_space<vmem>>, %arg2: memref<2x8x32xf32, #tpu.memory_space<vmem>>, %arg3: memref<32x32xf32, #tpu.memory_space<vmem>>, %arg4: memref<64x32xf32, #tpu.memory_space<vmem>>, %arg5: memref<2x32xf32, #tpu.memory_space<vmem>>, %arg6: memref<2x8xf32, #tpu.memory_space<vmem>>) attributes {dimension_semantics = [#tpu.dimension_semantics<parallel>], iteration_bounds = array<i64: 1>, scalar_prefetch = 0 : i64, scratch_operands = 0 : i64, tpu.core_type = #tpu.core_type<tc>, window_params = [{transform_indices = @transform_0, window_bounds = array<i64: 2, 32>}, {transform_indices = @transform_1, window_bounds = array<i64: 2, 8, 32>}, {pipeline_mode = #tpu.pipeline_mode<synchronous>, transform_indices = @transform_2, window_bounds = array<i64: 32, 32>}, {pipeline_mode = #tpu.pipeline_mode<synchronous>, transform_indices = @transform_3, window_bounds = array<i64: 64, 32>}, {transform_indices = @transform_4, window_bounds = array<i64: 2, 32>}, {transform_indices = @transform_5, window_bounds = array<i64: 2, 8>}]} {
    %c0 = arith.constant 0 : index
    %c0_0 = arith.constant 0 : index
    %c0_1 = arith.constant 0 : index
    %0 = vector.load %arg2[%c0, %c0_0, %c0_1] : memref<2x8x32xf32, #tpu.memory_space<vmem>>, vector<2x8x32xf32>
    %c0_2 = arith.constant 0 : index
    %c0_3 = arith.constant 0 : index
    %1 = vector.load %arg1[%c0_2, %c0_3] : memref<2x32xf32, #tpu.memory_space<vmem>>, vector<2x32xf32>
    %c0_4 = arith.constant 0 : index
    %c0_5 = arith.constant 0 : index
    %2 = vector.load %arg3[%c0_4, %c0_5] : memref<32x32xf32, #tpu.memory_space<vmem>>, vector<32x32xf32>
    %cst = arith.constant dense<0.000000e+00> : vector<2x32xf32>
    %3 = tpu.matmul %1, %2, %cst {dimension_numbers = #tpu.dot_dimension_numbers<[1], [0], [0], [1], [0, 0, 1, 1], [], []>} : vector<2x32xf32>, vector<32x32xf32>, vector<2x32xf32> -> vector<2x32xf32>
    %4 = vector.shape_cast %3 : vector<2x32xf32> to vector<2x1x32xf32>
    %5 = vector.broadcast %4 : vector<2x1x32xf32> to vector<2x8x32xf32>
    %6 = arith.mulf %5, %0 : vector<2x8x32xf32>
    %cst_6 = arith.constant dense<0.000000e+00> : vector<2x8xf32>
    %7 = vector.multi_reduction <add>, %6, %cst_6 [2] : vector<2x8x32xf32> to vector<2x8xf32>
    %cst_7 = arith.constant dense<0xFF800000> : vector<2xf32>
    %8 = vector.multi_reduction <maximumf>, %7, %cst_7 [1] : vector<2x8xf32> to vector<2xf32>
    %9 = vector.shape_cast %8 : vector<2xf32> to vector<2x1xf32>
    %10 = vector.broadcast %9 : vector<2x1xf32> to vector<2x8xf32>
    %11 = arith.subf %7, %10 : vector<2x8xf32>
    %12 = math.exp %11 : vector<2x8xf32>
    %cst_8 = arith.constant dense<0.000000e+00> : vector<2xf32>
    %13 = vector.multi_reduction <add>, %12, %cst_8 [1] : vector<2x8xf32> to vector<2xf32>
    %14 = vector.shape_cast %13 : vector<2xf32> to vector<2x1xf32>
    %15 = tpu.reciprocal %14 : vector<2x1xf32> -> vector<2x1xf32>
    %16 = vector.shape_cast %12 : vector<2x8xf32> to vector<2x8x1xf32>
    %17 = vector.broadcast %16 : vector<2x8x1xf32> to vector<2x8x32xf32>
    %18 = arith.mulf %17, %0 : vector<2x8x32xf32>
    %cst_9 = arith.constant dense<0.000000e+00> : vector<2x32xf32>
    %19 = vector.multi_reduction <add>, %18, %cst_9 [1] : vector<2x8x32xf32> to vector<2x32xf32>
    %20 = vector.broadcast %15 : vector<2x1xf32> to vector<2x32xf32>
    %21 = arith.mulf %19, %20 : vector<2x32xf32>
    %c0_10 = arith.constant 0 : index
    %c0_11 = arith.constant 0 : index
    %22 = vector.load %arg4[%c0_10, %c0_11] : memref<64x32xf32, #tpu.memory_space<vmem>>, vector<32x32xf32>
    %cst_12 = arith.constant dense<0.000000e+00> : vector<2x32xf32>
    %23 = tpu.matmul %21, %22, %cst_12 {dimension_numbers = #tpu.dot_dimension_numbers<[1], [0], [0], [1], [0, 0, 1, 1], [], []>} : vector<2x32xf32>, vector<32x32xf32>, vector<2x32xf32> -> vector<2x32xf32>
    %c32 = arith.constant 32 : index
    %c0_13 = arith.constant 0 : index
    %24 = vector.load %arg4[%c32, %c0_13] : memref<64x32xf32, #tpu.memory_space<vmem>>, vector<32x32xf32>
    %cst_14 = arith.constant dense<0.000000e+00> : vector<2x32xf32>
    %25 = tpu.matmul %3, %24, %cst_14 {dimension_numbers = #tpu.dot_dimension_numbers<[1], [0], [0], [1], [0, 0, 1, 1], [], []>} : vector<2x32xf32>, vector<32x32xf32>, vector<2x32xf32> -> vector<2x32xf32>
    %26 = arith.addf %23, %25 : vector<2x32xf32>
    %27 = math.tanh %26 : vector<2x32xf32>
    %c0_15 = arith.constant 0 : index
    %c0_16 = arith.constant 0 : index
    %28 = vector.load %arg5[%c0_15, %c0_16] : memref<2x32xf32, #tpu.memory_space<vmem>>, vector<2x32xf32>
    tpu.vector_store %arg5[%c0_15, %c0_16], %27 {strides = array<i32>} : memref<2x32xf32, #tpu.memory_space<vmem>>, vector<2x32xf32>,
    %29 = vector.broadcast %15 : vector<2x1xf32> to vector<2x8xf32>
    %30 = arith.mulf %12, %29 : vector<2x8xf32>
    %c0_17 = arith.constant 0 : index
    %c0_18 = arith.constant 0 : index
    %31 = vector.load %arg6[%c0_17, %c0_18] : memref<2x8xf32, #tpu.memory_space<vmem>>, vector<2x8xf32>
    tpu.vector_store %arg6[%c0_17, %c0_18], %30 {strides = array<i32>} : memref<2x8xf32, #tpu.memory_space<vmem>>, vector<2x8xf32>,
    return
  }
  func.func @transform_0(%arg0: i32) -> (i32, i32) {
    %c0_i32 = arith.constant 0 : i32
    %c0_i32_0 = arith.constant 0 : i32
    return %arg0, %c0_i32 : i32, i32
  }
  func.func @transform_1(%arg0: i32) -> (i32, i32, i32) {
    %c0_i32 = arith.constant 0 : i32
    %c0_i32_0 = arith.constant 0 : i32
    %c0_i32_1 = arith.constant 0 : i32
    return %arg0, %c0_i32, %c0_i32_0 : i32, i32, i32
  }
  func.func @transform_2(%arg0: i32) -> (i32, i32) {
    %c0_i32 = arith.constant 0 : i32
    %c0_i32_0 = arith.constant 0 : i32
    %c0_i32_1 = arith.constant 0 : i32
    return %c0_i32, %c0_i32_0 : i32, i32
  }
  func.func @transform_3(%arg0: i32) -> (i32, i32) {
    %c0_i32 = arith.constant 0 : i32
    %c0_i32_0 = arith.constant 0 : i32
    %c0_i32_1 = arith.constant 0 : i32
    return %c0_i32, %c0_i32_0 : i32, i32
  }
  func.func @transform_4(%arg0: i32) -> (i32, i32) {
    %c0_i32 = arith.constant 0 : i32
    %c0_i32_0 = arith.constant 0 : i32
    return %arg0, %c0_i32 : i32, i32
  }
  func.func @transform_5(%arg0: i32) -> (i32, i32) {
    %c0_i32 = arith.constant 0 : i32
    %c0_i32_0 = arith.constant 0 : i32
    return %arg0, %c0_i32 : i32, i32
  }
}

</mosaic_0001>

<bundles_post_ra>
// kernel: attention_layer_forward.1
= control target key start
LH: loop header
LB: loop body
LE: loop exit
PB: predicated region body
PF: predicated region fallthrough
CT: control target
= control target key end

     0   :  { %11 = vsyncpa [#allocation3], 0  ;;  %v579_v3 = vmov 0.0|0.0   ;;  %vm580_vm0 = vmmov 0   ;;  %v581_v6 = vmov 0.0   ;;  %s728_s0 = inlined_call_operand.vmem [shape: f32[2,32], index: 0, kind: input, shape index: {}]   ;;  %s729_s1 = inlined_call_operand.vmem [shape: f32[2,8,32], index: 1, kind: input, shape index: {}]   ;;  %s730_s2 = inlined_call_operand.vmem [shape: f32[32,32], index: 2, kind: input, shape index: {}]   ;;  %s731_s3 = inlined_call_operand.vmem [shape: f32[64,32], index: 3, kind: input, shape index: {}]   ;;  %s732_s4 = inlined_call_operand.hbm [shape: f32[2,32], index: 4, kind: output, shape index: {0}]   ;;  %s733_s5 = inlined_call_operand.hbm [shape: f32[2,8], index: 5, kind: output, shape index: {1}]  }
   0x1   :  { %v24_v0 = vld [vmem:[%s730_s2] sm:$0xff]  ;;  %v25_v1 = vld [vmem:[%s730_s2 + $0x8] sm:$0xff]  ;;  %v26_v2 = vld [vmem:[%s730_s2 + $0x10] sm:$0xff]  ;;  %494 = vmatprep.subr.bf16.mxu0 %v579_v3  ;;  %469 = vmatprep.mubr.msk.f32.mxu0 %vm580_vm0, %v581_v6 }
   0x2   :  { %v495_v4 = vpack.c.bf16 %v25_v1, %v24_v0  ;;  %v27_v5 = vld [vmem:[%s730_s2 + $0x18] sm:$0xff]  ;;  %v229_v7 = vld [vmem:[%s731_s3 + $0x20] sm:$0xff]  ;;  %500 = vmatprep.subr.bf16.mxu1 %v579_v3  ;;  %v230_v8 = vld [vmem:[%s731_s3 + $0x28] sm:$0xff]  ;;  %480 = vmatprep.mubr.msk.f32.mxu1 %vm580_vm0, %v581_v6 }
   0x3   :  { %v231_v9 = vld [vmem:[%s731_s3 + $0x30] sm:$0xff]  ;;  %v232_v10 = vld [vmem:[%s731_s3 + $0x38] sm:$0xff]  ;;  %v498_v11 = vpack.c.bf16 %v27_v5, %v26_v2  ;;  %v501_v12 = vpack.c.bf16 %v230_v8, %v229_v7 }
   0x4   :  { %496 = vmatpush3.bf16.msra.mxu0 %v495_v4 }
   0x5   :  { %12 = vsyncpa [#allocation5], 0  ;;  %497 = vmatprep.subr.bf16.mxu0 %v579_v3  ;;  %502 = vmatpush3.bf16.msra.mxu1 %v501_v12  ;;  %v504_v13 = vpack.c.bf16 %v232_v10, %v231_v9  ;;  %v23_v14 = vld [vmem:[%s728_s0] sm:$0x3]  ;;  %vm28_vm1 = vcmask 261120   ;;  %v106_v17 = vlaneseq  ;;  %v22_v30 = vld [vmem:[%s729_s1 + $0x8] sm:$0xff] }
   0x6   :  { %503 = vmatprep.subr.bf16.mxu1 %v579_v3  ;;  %v582_v15 = vmov 1966171168   ;;  %v21_v27 = vld [vmem:[%s729_s1] sm:$0xff]  ;;  %vm155_vm2 = vcmask 1041409   ;;  %vm158_vm3 = vcmask 58368   ;;  %v583_v44 = vmov 0  }
   0x7   :  { %v104_v16 = vunpack.c.l.s4 %v582_v15  ;;  %v651_v19 = vshrl.u32 %v106_v17, 7  ;;  %v146_v36 = vand.u32 127, %v106_v17  ;;  %522 = vset.pattern.permute.xlu0 %v583_v44  ;;  %521 = vset.pattern.permute.xlu1 %v583_v44  ;;  %v225_v61 = vld [vmem:[%s731_s3] sm:$0xff]  ;;  %v226_v62 = vld [vmem:[%s731_s3 + $0x8] sm:$0xff]  ;;  %v227_v63 = vld [vmem:[%s731_s3 + $0x10] sm:$0xff] }
   0x8   :  { %499 = vmatpush3.bf16.msra.mxu0 %v498_v11  ;;  %v507_v0 = vpack.c.bf16 %v226_v62, %v225_v61  ;;  %v228_v1 = vld [vmem:[%s731_s3 + $0x18] sm:$0xff]  ;;  %s584_s3 = smov [#allocation4]  }
   0x9   :  { %505 = vmatpush3.bf16.msra.mxu1 %v504_v13  ;;  %v105_v18 = vunpack.c.0.s8 %v104_v16  ;;  %v656_v24 = vsub.s32 0, %v651_v19  ;;  %v670_v38 = vsub.s32 %v146_v36, %v651_v19  ;;  %v169_v45 = vsub.s32 1, %v651_v19  ;;  %s431_s20 = sshll.u32 %s584_s3, 4  ;;  %s432_s20 = int_to_ptr.vmem [resolvable:$true] %s431_s20 }
   0xa   :  { %506 = vmatprep.subr.bf16.mxu1 %v579_v3  ;;  %v510_v2 = vpack.c.bf16 %v228_v1, %v227_v63  ;;  %s531_s21 = scalar_lea.vmem %s432_s20, 32  ;;  %p536_p1 = scmp.lt.s32.totalorder %s432_s20, %s432_s20 }
   0xb   :  { %470 = vmatmul.mubr.msk.f32.vlgmr.msra.gmra.mrb[0].mxu0 %vm28_vm1, %v23_v14  ;;  %v108_v20 = vsub.s32 %v105_v18, %v651_v19  ;;  %p532_p0 = scmp.ne.s32.totalorder %s432_s20, %s531_s21  ;;  %p537_p2 = scmp.lt.s32.totalorder %s531_s21, %s531_s21 }
   0xd   :  { %p538_p3 = por %p537_p2, %p536_p1 }
   0xf   :  { %p539_p4 = pnand %p538_p3, %p532_p0 }
  0xde   :  { %v98_v21 = vpop.f32.mrb[0].mxu0 }
  0xdf   :  { %v109_v22 = vrot.slane %v98_v21, %v108_v20  ;;  %v471_v23 = vpop.f32.mrb[1].mxu0  ;;  %481 = vmatmul.mubr.msk.f32.vlgmr.msra.gmra.mrb[0].mxu1 %vm28_vm1, %v98_v21 }
  0xe0   :  { %491 = vmatprep.mubr.msk.f32.mxu1 %vm580_vm0, %v581_v6  ;;  %508 = vmatpush3.bf16.msra.mxu1 %v507_v0 }
  0xe1   :  { %v110_v25 = vcombine.high %v109_v22, %v109_v22  ;;  %v117_v26 = vrot.slane %v109_v22, %v108_v20  ;;  %509 = vmatprep.subr.bf16.mxu1 %v579_v3 }
  0xe3   :  { %v124_v28 = vrot.slane %v110_v25, %v108_v20  ;;  %v128_v29 = vrot.slane %v117_v26, %v656_v24 }
  0xe4   :  { %511 = vmatpush3.bf16.msra.mxu1 %v510_v2 }
  0xe5   :  { %v135_v31 = vmul.f32 %v128_v29, %v21_v27  ;;  %v132_v32 = vrot.slane %v124_v28, %v656_v24 }
  0xe7   :  { %v137_v33 = vsel %vm28_vm1, %v135_v31, 0.0  ;;  %v136_v34 = vmul.f32 %v132_v32, %v22_v30 }
  0xe8   :  { %138 = vadd.xlane.f32.xlu0 %v137_v33 }
  0xe9   :  { %v140_v35 = vsel %vm28_vm1, %v136_v34, 0.0 }
  0xec   :  { %141 = vadd.xlane.f32.xlu0 %v140_v35 }
 0x175   :  { %v139_v37 = vpop.xlane.xlu0 %138 }
 0x176   :  { %v150_v40 = vrot.slane %v139_v37, %v670_v38 }
 0x179   :  { %v142_v39 = vpop.xlane.xlu0 %141 }
 0x17a   :  { %v154_v41 = vrot.slane %v142_v39, %v670_v38 }
 0x17c   :  { %v156_v42 = vsel %vm155_vm2, %v154_v41, %v150_v40 }
 0x17d   :  { %v159_v43 = vsel %vm158_vm3, %v156_v42, -inf }
 0x17e   :  { %160 = vmax.xlane.f32.xlu1 %v159_v43 }
 0x20b   :  { %v161_v46 = vpop.xlane.xlu1 %160 }
 0x20c   :  { %v166_v47 = vrot.slane %v161_v46, %v656_v24  ;;  %v170_v48 = vrot.slane %v161_v46, %v169_v45 }
 0x20e   :  { %v173_v49 = vsub.f32 %v139_v37, %v166_v47  ;;  %v174_v50 = vsub.f32 %v142_v39, %v170_v48 }
 0x210   :  { %v175_v51 = vmul.f32 1.442695, %v173_v49  ;;  %v177_v52 = vmul.f32 1.442695, %v174_v50 }
 0x212   :  { %523 = vpow2.f32 %v175_v51 }
 0x213   :  { %525 = vpow2.f32 %v177_v52 }
 0x21c   :  { %v524_v53 = vpop.eup %523 }
 0x21d   :  { %v526_v54 = vpop.eup %525  ;;  %182 = vperm.xlu1 %521, %v524_v53  }
 0x21e   :  { %185 = vperm.xlu0 %522, %v526_v54  }
 0x29c   :  { %v183_v55 = vpop.permute.xlu1 %182 }
 0x29d   :  { %v186_v56 = vpop.permute.xlu0 %185  ;;  %v190_v57 = vrot.slane %v183_v55, %v670_v38  ;;  %v203_v5 = vmul.f32 %v183_v55, %v21_v27 }
 0x29e   :  { %v194_v58 = vrot.slane %v186_v56, %v670_v38  ;;  %v204_v4 = vmul.f32 %v186_v56, %v22_v30 }
 0x29f   :  { %v205_v7 = vsel %vm28_vm1, %v203_v5, 0.0 }
 0x2a0   :  { %v195_v59 = vsel %vm155_vm2, %v194_v58, %v190_v57  ;;  %v212_v6 = vsel %vm28_vm1, %v204_v4, 0.0  ;;  %v206_v9 = vrot.slane %v205_v7, 4 }
 0x2a1   :  { %v197_v60 = vsel %vm158_vm3, %v195_v59, 0.0  ;;  %v213_v8 = vrot.slane %v212_v6, 4 }
 0x2a2   :  { %198 = vadd.xlane.f32.xlu1 %v197_v60  ;;  %v207_v11 = vadd.f32 %v206_v9, %v205_v7 }
 0x2a3   :  { %v214_v10 = vadd.f32 %v213_v8, %v212_v6 }
 0x2a4   :  { %v208_v14 = vrot.slane %v207_v11, 2 }
 0x2a5   :  { %v215_v12 = vrot.slane %v214_v10, 2 }
 0x2a6   :  { %v209_v16 = vadd.f32 %v208_v14, %v207_v11 }
 0x2a7   :  { %v216_v15 = vadd.f32 %v215_v12, %v214_v10 }
 0x2a8   :  { %v210_v18 = vrot.slane %v209_v16, 1 }
 0x2a9   :  { %v217_v17 = vrot.slane %v216_v15, 1 }
 0x2aa   :  { %v211_v22 = vadd.f32 %v210_v18, %v209_v16 }
 0x2ab   :  { %v218_v19 = vadd.f32 %v217_v17, %v216_v15 }
 0x32f   :  { %v199_v13 = vpop.xlane.xlu1 %198 }
 0x330   :  { %527 = vrcp.f32 %v199_v13 }
 0x33a   :  { %v528_v3 = vpop.eup %527 }
 0x33b   :  { %v387_v20 = vrot.slane %v528_v3, %v656_v24  ;;  %v220_v21 = vrot.slane %v528_v3, 1  ;;  %v391_v26 = vrot.slane %v528_v3, %v169_v45  ;;  %v223_v27 = vmul.f32 %v528_v3, %v211_v22 }
 0x33d   :  { %v394_v23 = vmul.f32 %v524_v53, %v387_v20  ;;  %v224_v25 = vmul.f32 %v220_v21, %v218_v19  ;;  %v395_v30 = vmul.f32 %v526_v54, %v391_v26 }
 0x33f   :  { %399 = vperm.xlu0 %522, %v394_v23   ;;  %v307_v28 = vrot.slane %v224_v25, 7 }
 0x341   :  { %v308_v29 = vsel %vm155_vm2, %v307_v28, %v223_v27 }
 0x342   :  { %492 = vmatmul.mubr.msk.f32.vlgmr.msra.gmra.mrb[0].mxu1 %vm28_vm1, %v308_v29 }
 0x343   :  { %402 = vperm.xlu0 %522, %v395_v30  }
 0x3be   :  { %v400_v31 = vpop.permute.xlu0 %399 }
 0x3bf   :  { %v407_v24 = vrot.slane %v400_v31, %v670_v38 }
 0x3c2   :  { %v403_v32 = vpop.permute.xlu0 %402 }
 0x3c3   :  { %v411_v33 = vrot.slane %v403_v32, %v670_v38 }
 0x3c5   :  { %v412_v34 = vsel %vm155_vm2, %v411_v33, %v407_v24 }
 0x3c6   :  { %414 = vst.msk [vmem:[#allocation4] sm:$0x3] %vm158_vm3, %v412_v34 }
 0x3c7   :  { %542 = shalt.err (!%p539_p4)
}
 0x3c8   :  { %s543_s24 = scalar_lea.hbm %s733_s5, 32 }
 0x3c9   :  { %p544_p5 = scmp.ne.s32.totalorder %s733_s5, %s543_s24  ;;  %p547_p6 = scmp.lt.u32.totalorder %s543_s24, %s733_s5 }
 0x3cb   :  { %p549_p7 = pnand %p547_p6, %p544_p5 }
 0x3cd   :  { %552 = shalt.err (!%p549_p7)
}
 0x3ce   :  { %434 = dma.vmem_to_hbm [thread:$0]  %s432_s20, 32, %s733_s5, [#allocation5]   ;;  %vm382_vm4 = vcmask 254976  }
 0x3cf   :  { %s585_s6 = smov [#allocation2]  }
 0x3d0   :  { %s421_s7 = sshll.u32 %s585_s6, 4  ;;  %s422_s7 = int_to_ptr.vmem [resolvable:$true] %s421_s7 }
 0x3d1   :  { %s553_s2 = scalar_lea.vmem %s422_s7, 32  ;;  %p558_p9 = scmp.lt.s32.totalorder %s422_s7, %s422_s7 }
 0x3d2   :  { %p554_p8 = scmp.ne.s32.totalorder %s422_s7, %s553_s2  ;;  %p559_p10 = scmp.lt.s32.totalorder %s553_s2, %s553_s2 }
 0x3d4   :  { %p560_p11 = por %p559_p10, %p558_p9 }
 0x3d6   :  { %p561_p12 = pnand %p560_p11, %p554_p8 }
 0x415   :  { %v377_v35 = vpop.f32.mrb[0].mxu1 }
 0x416   :  { %529 = vtanh.f32 %v377_v35  ;;  %v493_v36 = vpop.f32.mrb[1].mxu1 }
 0x420   :  { %v530_v37 = vpop.eup %529 }
 0x421   :  { %383 = vst.msk [vmem:[#allocation2] sm:$0x3] %vm382_vm4, %v530_v37 }
 0x422   :  { %564 = shalt.err (!%p561_p12)
}
 0x423   :  { %s565_s5 = scalar_lea.hbm %s732_s4, 32 }
 0x424   :  { %p566_p13 = scmp.ne.s32.totalorder %s732_s4, %s565_s5  ;;  %p569_p0 = scmp.lt.u32.totalorder %s565_s5, %s732_s4 }
 0x426   :  { %p571_p1 = pnand %p569_p0, %p566_p13 }
 0x428   :  { %574 = shalt.err (!%p571_p1)
}
 0x429   :  { %424 = dma.vmem_to_hbm [thread:$0]  %s422_s7, 32, %s732_s4, [#allocation3]  }
 0x42a   :  { %575 = dma.done.wait [#allocation3], 32  }
 0x42b   :  { %576 = vsyncadd [#allocation3], 4294967264 }
 0x42c   :  { %577 = dma.done.wait [#allocation5], 32  }
 0x42d   :  { %578 = vsyncadd [#allocation5], 4294967264 }
 0x42e   :  { %441 = vsyncpa [#allocation3], 1 }
 0x42f   :  { %442 = vsyncpa [#allocation5], 1 }

</bundles_post_ra>
